<compile_context>
chip_gen: v5e
topology: v5e:2x2
jax: 0.10.0
libtpu: 0.0.40
codegen_flags: <defaults>
</compile_context>

<pallas_src>
import jax
import jax.numpy as jnp
from jax import lax
from jax.experimental import pallas as pl
from jax.experimental.pallas import tpu as pltpu


def _make_kernel(num_features, tile_f, need_f_mask):
    """Kernel over grid (batch_tiles, feature_tiles); the feature axis is the
    innermost 'arbitrary' reduction axis."""

    def kernel(x_ref, w_ref, b_ref, o_ref, acc_ref):
        # x_ref:  (tile_b, tile_f) VMEM     w_ref: (1, tile_f) VMEM
        # b_ref:  (1,) SMEM                 o_ref: (tile_b, 1) VMEM
        # acc_ref:(tile_b, 1) f32 VMEM scratch, live across the feature axis
        k = pl.program_id(1)

        @pl.when(k == 0)
        def _init():
            acc_ref[...] = jnp.zeros_like(acc_ref)

        prod = x_ref[...].astype(jnp.float32) * w_ref[...].astype(jnp.float32)
        if need_f_mask:
            # Ragged last feature block: zero columns past num_features so
            # garbage in the padded tail never pollutes the accumulator.
            col = lax.broadcasted_iota(jnp.int32, prod.shape, 1)
            prod = jnp.where(col < (num_features - k * tile_f), prod, 0.0)

        # VPU multiply above, XLU lane-reduce below -- both hide under x DMA.
        acc_ref[...] += jnp.sum(prod, axis=-1, keepdims=True)

        @pl.when(k == pl.num_programs(1) - 1)
        def _finalize():
            o_ref[...] = (acc_ref[...] + b_ref[0]).astype(o_ref.dtype)

    return kernel


def _vmem_limit_bytes():
    """Generation-aware scoped-VMEM limit with headroom below physical."""
    cap = 64 << 20  # conservative default (v7x per-TC capacity)
    try:
        cap = int(pltpu.get_tpu_info().vmem_capacity_bytes)
    except Exception:
        pass
    # ~38 MiB on v7x (64 MiB physical), ~77 MiB on v5e/v6e (128 MiB physical)
    return max(16 << 20, min(int(cap * 0.6), cap - (16 << 20)))


def _pick_tiles(batch, features, itemsize, vmem_limit):
    """Bytes-based tiling: MB-scale x blocks; tile the feature (reduction)
    axis only when even an 8-row full-F block would overflow the budget."""
    target_block = 4 << 20                     # ~85%+ of HBM roofline per sweep
    hard_cap = max(vmem_limit // 3, 1 << 20)   # 2 x-buffers + w/acc/out slack
    block_cap = min(target_block, hard_cap)

    if 8 * features * itemsize <= hard_cap:
        tile_f = features                      # whole reduction in one block
    else:
        tile_f = max(128, (hard_cap // (8 * itemsize)) // 128 * 128)

    row_bytes = tile_f * itemsize
    tile_b = max(8, (max(block_cap, 8 * row_bytes) // row_bytes) // 8 * 8)
    if tile_b >= batch:
        tile_b = batch                         # single, exact batch block
    return tile_b, tile_f


def simple_logistic(x, weight, bias):
    """x: (B, F); weight: (1, F) (PyTorch nn.Linear layout); bias: (1,).
    Returns (B, 1) = x @ weight.T + bias."""
    B, F = x.shape
    itemsize = x.dtype.itemsize
    vmem_limit = _vmem_limit_bytes()
    tile_b, tile_f = _pick_tiles(B, F, itemsize, vmem_limit)
    num_b = pl.cdiv(B, tile_b)
    num_f = pl.cdiv(F, tile_f)
    need_f_mask = (tile_f != F) and (F % tile_f != 0)

    kernel = _make_kernel(F, tile_f, need_f_mask)

    # TODO(synk): on v7x, if "parallel" isn't sharding the batch axis across
    # both TensorCores, switch to pltpu.CORE_PARALLEL (or pl.core_map).
    out = pl.pallas_call(
        kernel,
        out_shape=jax.ShapeDtypeStruct((B, 1), jnp.float32),
        grid_spec=pltpu.PrefetchScalarGridSpec(
            num_scalar_prefetch=0,
            grid=(num_b, num_f),
            in_specs=[
                # streamed x tile, double-buffered by the BlockSpec pipeline
                pl.BlockSpec((tile_b, tile_f), lambda i, k: (i, k)),
                # weight row: one feature block per k; resident when num_f == 1
                pl.BlockSpec((1, tile_f), lambda i, k: (0, k)),
                # bias: scalar in SMEM (no VMEM tile / per-step DMA)
                pl.BlockSpec(memory_space=pltpu.MemorySpace.SMEM),
            ],
            # Column output: same block across k (accumulator semantics).
            # Output bytes are 1/F of input bytes, so narrow stores are free
            # and we avoid the column->row relayout of a lane-dense slab.
            out_specs=pl.BlockSpec((tile_b, 1), lambda i, k: (i, 0)),
            scratch_shapes=[pltpu.VMEM((tile_b, 1), jnp.float32)],
        ),
        compiler_params=pltpu.CompilerParams(
            dimension_semantics=("parallel", "arbitrary"),
            vmem_limit_bytes=int(vmem_limit),
        ),
        cost_estimate=pl.CostEstimate(
            flops=2 * B * F,
            transcendentals=0,
            bytes_accessed=B * F * itemsize + F * itemsize + B * 4 + 4,
        ),
    )(x, weight, bias)
    return out


if __name__ == "__main__":
    key = jax.random.PRNGKey(0)
    kx, kw, kb = jax.random.split(key, 3)

    B, F = 8, 32  # small shapes: batch=8, num_features=32

    x = jax.random.normal(kx, (B, F), dtype=jnp.float32)
    # Mimic nn.Linear's uniform(-1/sqrt(F), 1/sqrt(F)) init, deterministically.
    bound = 1.0 / jnp.sqrt(jnp.float32(F))
    weight = jax.random.uniform(kw, (1, F), minval=-bound, maxval=bound,
                                dtype=jnp.float32)
    bias = jax.random.uniform(kb, (1,), minval=-bound, maxval=bound,
                              dtype=jnp.float32)

    out = jax.block_until_ready(simple_logistic(x, weight, bias))

    # Reference: same math as PyTorch nn.Linear forward (no sigmoid in forward).
    ref = x @ weight.T + bias
    assert out.shape == (B, 1)
    assert jnp.allclose(out, ref, atol=1e-5, rtol=1e-5)

    print("KERNEL_OK")
</pallas_src>

<mosaic_0001>
module attributes {stable_mosaic.version = 11 : i64} {
  func.func @kernel(%arg0: i32, %arg1: i32, %arg2: memref<8x32xf32, #tpu.memory_space<vmem>>, %arg3: memref<1x32xf32, #tpu.memory_space<vmem>>, %arg4: memref<1xf32, #tpu.memory_space<smem>>, %arg5: memref<8x1xf32, #tpu.memory_space<vmem>>, %arg6: memref<8x1xf32, #tpu.memory_space<vmem>>) attributes {dimension_semantics = [#tpu.dimension_semantics<parallel>, #tpu.dimension_semantics<arbitrary>], iteration_bounds = array<i64: 1, 1>, scalar_prefetch = 0 : i64, scratch_operands = 1 : i64, tpu.core_type = #tpu.core_type<tc>, window_params = [{transform_indices = @transform_0, window_bounds = array<i64: 8, 32>}, {transform_indices = @transform_1, window_bounds = array<i64: 1, 32>}, {transform_indices = @transform_2, window_bounds = array<i64: 1>}, {transform_indices = @transform_3, window_bounds = array<i64: 8, 1>}]} {
    %c0_i32 = arith.constant 0 : i32
    %0 = arith.cmpi eq, %arg1, %c0_i32 : i32
    %1 = arith.extui %0 : i1 to i32
    %c0_i32_0 = arith.constant 0 : i32
    %2 = arith.cmpi ne, %1, %c0_i32_0 : i32
    scf.if %2 {
      %cst_10 = arith.constant 0.000000e+00 : f32
      %15 = vector.broadcast %cst_10 : f32 to vector<8x1xf32>
      %c0_11 = arith.constant 0 : index
      %c0_12 = arith.constant 0 : index
      %16 = vector.load %arg6[%c0_11, %c0_12] : memref<8x1xf32, #tpu.memory_space<vmem>>, vector<8x1xf32>
      tpu.vector_store %arg6[%c0_11, %c0_12], %15 {strides = array<i32>} : memref<8x1xf32, #tpu.memory_space<vmem>>, vector<8x1xf32>,
    } else {
    }
    %c0 = arith.constant 0 : index
    %c0_1 = arith.constant 0 : index
    %3 = vector.load %arg2[%c0, %c0_1] : memref<8x32xf32, #tpu.memory_space<vmem>>, vector<8x32xf32>
    %c0_2 = arith.constant 0 : index
    %c0_3 = arith.constant 0 : index
    %4 = vector.load %arg3[%c0_2, %c0_3] : memref<1x32xf32, #tpu.memory_space<vmem>>, vector<1x32xf32>
    %5 = vector.broadcast %4 : vector<1x32xf32> to vector<8x32xf32>
    %6 = arith.mulf %3, %5 : vector<8x32xf32>
    %c0_4 = arith.constant 0 : index
    %c0_5 = arith.constant 0 : index
    %7 = vector.load %arg6[%c0_4, %c0_5] : memref<8x1xf32, #tpu.memory_space<vmem>>, vector<8x1xf32>
    %cst = arith.constant dense<0.000000e+00> : vector<8xf32>
    %8 = vector.multi_reduction <add>, %6, %cst [1] : vector<8x32xf32> to vector<8xf32>
    %9 = vector.shape_cast %8 : vector<8xf32> to vector<8x1xf32>
    %10 = arith.addf %7, %9 : vector<8x1xf32>
    %c0_6 = arith.constant 0 : index
    %c0_7 = arith.constant 0 : index
    %11 = vector.load %arg6[%c0_6, %c0_7] : memref<8x1xf32, #tpu.memory_space<vmem>>, vector<8x1xf32>
    tpu.vector_store %arg6[%c0_6, %c0_7], %10 {strides = array<i32>} : memref<8x1xf32, #tpu.memory_space<vmem>>, vector<8x1xf32>,
    %c0_i32_8 = arith.constant 0 : i32
    %12 = arith.cmpi eq, %arg1, %c0_i32_8 : i32
    %13 = arith.extui %12 : i1 to i32
    %c0_i32_9 = arith.constant 0 : i32
    %14 = arith.cmpi ne, %13, %c0_i32_9 : i32
    scf.if %14 {
      %c0_10 = arith.constant 0 : index
      %c0_11 = arith.constant 0 : index
      %15 = vector.load %arg6[%c0_10, %c0_11] : memref<8x1xf32, #tpu.memory_space<vmem>>, vector<8x1xf32>
      %c0_12 = arith.constant 0 : index
      %16 = memref.load %arg4[%c0_12] : memref<1xf32, #tpu.memory_space<smem>>
      %17 = vector.broadcast %16 : f32 to vector<8x1xf32>
      %18 = arith.addf %15, %17 : vector<8x1xf32>
      %c0_13 = arith.constant 0 : index
      %c0_14 = arith.constant 0 : index
      %19 = vector.load %arg5[%c0_13, %c0_14] : memref<8x1xf32, #tpu.memory_space<vmem>>, vector<8x1xf32>
      tpu.vector_store %arg5[%c0_13, %c0_14], %18 {strides = array<i32>} : memref<8x1xf32, #tpu.memory_space<vmem>>, vector<8x1xf32>,
    } else {
    }
    return
  }
  func.func @transform_0(%arg0: i32, %arg1: i32) -> (i32, i32) {
    %c0_i32 = arith.constant 0 : i32
    return %arg0, %arg1 : i32, i32
  }
  func.func @transform_1(%arg0: i32, %arg1: i32) -> (i32, i32) {
    %c0_i32 = arith.constant 0 : i32
    %c0_i32_0 = arith.constant 0 : i32
    return %c0_i32, %arg1 : i32, i32
  }
  func.func @transform_2(%arg0: i32, %arg1: i32) -> i32 {
    %c0_i32 = arith.constant 0 : i32
    %c0_i32_0 = arith.constant 0 : i32
    return %c0_i32 : i32
  }
  func.func @transform_3(%arg0: i32, %arg1: i32) -> (i32, i32) {
    %c0_i32 = arith.constant 0 : i32
    %c0_i32_0 = arith.constant 0 : i32
    return %arg0, %c0_i32 : i32, i32
  }
}

</mosaic_0001>

<bundles_post_ra>
// kernel: tpu_custom_call.1
= control target key start
LH: loop header
LB: loop body
LE: loop exit
PB: predicated region body
PF: predicated region fallthrough
CT: control target
= control target key end

     0   :  { %9 = vsyncpa [#allocation5], 0  ;;  %s91_s15 = smov [#allocation4]   ;;  %s128_s0 = inlined_call_operand.hbm [shape: f32[8,32], index: 0, kind: input, shape index: {}]   ;;  %s129_s1 = inlined_call_operand.vmem [shape: f32[1,32], index: 1, kind: input, shape index: {}]   ;;  %s130_s2 = inlined_call_operand.<no memory space> [shape: f32[1], index: 2, kind: input, shape index: {}]   ;;  %s131_s3 = inlined_call_operand.vmem [shape: f32[8,1], index: 3, kind: output, shape index: {}]  }
   0x1   :  { %s15_s14 = sshll.u32 %s128_s0, 4  ;;  %s17_s16 = sshll.u32 %s91_s15, 4  ;;  %s16_s14 = int_to_ptr.hbm [resolvable:$true] %s15_s14  ;;  %s18_s16 = int_to_ptr.vmem [resolvable:$true] %s17_s16 }
   0x2   :  { %20 = dma.hbm_to_vmem [thread:$0]  %s16_s14, 128, %s18_s16, [#allocation5]  }
   0x3   :  { %89 = dma.done.wait [#allocation5], 128  }
   0x4   :  { %90 = vsyncadd [#allocation5], 4294967168  ;;  %vm33_vm0 = vcmask 7168   ;;  %v92_v0 = vmov 0.0   ;;  %v35_v1 = vld [vmem:[#allocation4] sm:$0xff]  ;;  %vm42_vm1 = vcmask 261120   ;;  %v54_v8 = vstv %s130_s2 }
   0x5   :  { %34 = vst.msk [vmem:[#allocation2] sm:$0xff] %vm33_vm0, %v92_v0  ;;  %v64_v2 = vld [vmem:[%s129_s1] ss:$0 sm:$0xff] }
   0x6   :  { %v40_v3 = vmul.f32 %v64_v2, %v35_v1 }
   0x8   :  { %v43_v4 = vsel %vm42_vm1, %v40_v3, 0.0 }
   0x9   :  { %44 = vadd.xlane.f32.xlu0 %v43_v4 }
   0xc   :  { %v41_v5 = vld [vmem:[#allocation2] sm:$0xff] }
  0x7c   :  { %v45_v6 = vpop.xlane.xlu0 %44 }
  0x7d   :  { %v46_v7 = vadd.f32 %v45_v6, %v41_v5 }
  0x7f   :  { %48 = vst.msk [vmem:[#allocation2] sm:$0xff] %vm33_vm0, %v46_v7 }
  0x86   :  { %v52_v9 = vld [vmem:[#allocation2] sm:$0xff] }
  0x87   :  { %v55_v10 = vadd.f32 %v54_v8, %v52_v9 }
  0x89   :  { %56 = vst.msk [vmem:[%s131_s3] sm:$0xff] %vm33_vm0, %v55_v10 }
  0x8a   :  { %61 = vsyncpa [#allocation5], 1 }

</bundles_post_ra>
